<compile_context>
chip_gen: v7x
topology: tpu7x:2x2x1
jax: 0.10.0
libtpu: 0.0.40
codegen_flags: <defaults>
</compile_context>

<pallas_src>
import functools

import jax
import jax.numpy as jnp
from jax.experimental import pallas as pl
from jax.experimental.pallas import tpu as pltpu

_LANES = 128


def _round_up(x, m):
    return (x + m - 1) // m * m


def _bce_dice_partials_kernel(x_ref, t_ref,
                              inter_ref, dsum_ref, bce_ref,
                              *, d_valid, block_rows, num_chunks, needs_mask):
    """Accumulate per-batch partial sums over feature chunks.

    x_ref/t_ref blocks: (1, block_rows, 128).
    Outputs: (1, 1, 128) resident accumulators (lane-wise partial sums,
    reduced over lanes in the wrapper).
    """
    k = pl.program_id(1)

    @pl.when(k == 0)
    def _init():
        inter_ref[...] = jnp.zeros_like(inter_ref)
        dsum_ref[...] = jnp.zeros_like(dsum_ref)
        bce_ref[...] = jnp.zeros_like(bce_ref)

    x = x_ref[0].astype(jnp.float32)   # (block_rows, 128)
    t = t_ref[0].astype(jnp.float32)

    xt = x * t                         # reused by dice numerator and BCE term

    # --- Dice partial sums (zero padding contributes nothing) ---
    inter_ref[0] = inter_ref[0] + jnp.sum(xt, axis=0, keepdims=True)
    dsum_ref[0] = dsum_ref[0] + jnp.sum(x + t, axis=0, keepdims=True)

    # --- BCE-with-logits, numerically stable elementwise term ---
    #   max(x, 0) - x*t + log(1 + exp(-|x|))
    bce_elem = jnp.maximum(x, 0.0) - xt + jnp.log1p(jnp.exp(-jnp.abs(x)))

    if not needs_mask:
        bce_ref[0] = bce_ref[0] + jnp.sum(bce_elem, axis=0, keepdims=True)
    else:
        # Zero-padded elements would each contribute log(2) to the BCE sum.
        # All padding lives in the last chunk, so only mask there.
        last = num_chunks - 1

        @pl.when(k != last)
        def _full():
            bce_ref[0] = bce_ref[0] + jnp.sum(bce_elem, axis=0, keepdims=True)

        @pl.when(k == last)
        def _masked():
            rows = jax.lax.broadcasted_iota(jnp.int32, (block_rows, _LANES), 0)
            lanes = jax.lax.broadcasted_iota(jnp.int32, (block_rows, _LANES), 1)
            flat = (k * block_rows + rows) * _LANES + lanes
            masked = jnp.where(flat < d_valid, bce_elem, 0.0)
            bce_ref[0] = bce_ref[0] + jnp.sum(masked, axis=0, keepdims=True)


def bce_dice_loss(input_nchw, target_nchw, *, max_block_rows=2048):
    """input/target: (N, C, H, W) logits / {0,1} targets -> scalar f32 loss."""
    n = input_nchw.shape[0]
    d = 1
    for s in input_nchw.shape[1:]:
        d *= s

    # Keep native dtype in HBM; cast to f32 inside the kernel.
    x = input_nchw.reshape(n, d)
    t = target_nchw.reshape(n, d)

    rows = pl.cdiv(d, _LANES)
    block_rows = min(_round_up(rows, 8), max_block_rows)   # multiple of 8 sublanes
    num_chunks = pl.cdiv(rows, block_rows)
    rows_pad = num_chunks * block_rows
    d_pad = rows_pad * _LANES

    if d_pad != d:
        x = jnp.pad(x, ((0, 0), (0, d_pad - d)))
        t = jnp.pad(t, ((0, 0), (0, d_pad - d)))
    x3 = x.reshape(n, rows_pad, _LANES)
    t3 = t.reshape(n, rows_pad, _LANES)

    kernel = functools.partial(
        _bce_dice_partials_kernel,
        d_valid=d,
        block_rows=block_rows,
        num_chunks=num_chunks,
        needs_mask=(d_pad != d),
    )

    part_shape = jax.ShapeDtypeStruct((n, 1, _LANES), jnp.float32)
    in_spec = pl.BlockSpec((1, block_rows, _LANES), lambda b, k: (b, k, 0))
    out_spec = pl.BlockSpec((1, 1, _LANES), lambda b, k: (b, 0, 0))

    inter, dsum, bce_p = pl.pallas_call(
        kernel,
        out_shape=(part_shape, part_shape, part_shape),
        grid_spec=pl.GridSpec(
            grid=(n, num_chunks),
            in_specs=[in_spec, in_spec],
            out_specs=(out_spec, out_spec, out_spec),
        ),
        compiler_params=pltpu.CompilerParams(
            dimension_semantics=("parallel", "arbitrary")),
    )(x3, t3)

    # --- Tiny final combine in plain JAX ---
    smooth = 1e-05
    intersection = jnp.sum(inter[:, 0, :], axis=-1)   # (N,) sum(x*t) per example
    denom = jnp.sum(dsum[:, 0, :], axis=-1)           # (N,) sum(x)+sum(t)

    dice = (2.0 * intersection + smooth) / (denom + smooth)
    dice_loss = 1.0 - jnp.sum(dice) / n

    bce = jnp.sum(bce_p) / (n * d)                    # mean over all elements
    return (0.5 * bce + dice_loss).astype(jnp.float32)


def _reference_loss(x, t):
    """Pure-JAX reference matching the PyTorch module exactly."""
    smooth = 1e-05
    n = x.shape[0]
    xf = x.reshape(n, -1).astype(jnp.float32)
    tf = t.reshape(n, -1).astype(jnp.float32)
    inter = jnp.sum(xf * tf, axis=1)
    dice = (2.0 * inter + smooth) / (jnp.sum(xf, axis=1) + jnp.sum(tf, axis=1) + smooth)
    dice_loss = 1.0 - jnp.sum(dice) / n
    bce_elem = jnp.maximum(xf, 0.0) - xf * tf + jnp.log1p(jnp.exp(-jnp.abs(xf)))
    bce = jnp.mean(bce_elem)
    return 0.5 * bce + dice_loss


if __name__ == "__main__":
    key = jax.random.PRNGKey(0)
    k1, k2 = jax.random.split(key)
    # Small segmentation-style shapes: (N, C, H, W)
    x = jax.random.normal(k1, (2, 4, 16, 16), dtype=jnp.float32)              # logits
    tgt = (jax.random.uniform(k2, (2, 4, 16, 16)) > 0.5).astype(jnp.float32)  # {0,1}

    loss = bce_dice_loss(x, tgt)
    jax.block_until_ready(loss)

    ref = _reference_loss(x, tgt)
    assert jnp.allclose(loss, ref, rtol=1e-4, atol=1e-5), (loss, ref)
    print("KERNEL_OK")
</pallas_src>

<mosaic_0001>
module attributes {stable_mosaic.version = 11 : i64} {
  func.func @_bce_dice_partials_kernel(%arg0: i32, %arg1: i32, %arg2: memref<1x8x128xf32, #tpu.memory_space<vmem>>, %arg3: memref<1x8x128xf32, #tpu.memory_space<vmem>>, %arg4: memref<1x1x128xf32, #tpu.memory_space<vmem>>, %arg5: memref<1x1x128xf32, #tpu.memory_space<vmem>>, %arg6: memref<1x1x128xf32, #tpu.memory_space<vmem>>) attributes {dimension_semantics = [#tpu.dimension_semantics<parallel>, #tpu.dimension_semantics<arbitrary>], iteration_bounds = array<i64: 2, 1>, scalar_prefetch = 0 : i64, scratch_operands = 0 : i64, tpu.core_type = #tpu.core_type<tc>, window_params = [{transform_indices = @transform_0, window_bounds = array<i64: 1, 8, 128>}, {transform_indices = @transform_1, window_bounds = array<i64: 1, 8, 128>}, {transform_indices = @transform_2, window_bounds = array<i64: 1, 1, 128>}, {transform_indices = @transform_3, window_bounds = array<i64: 1, 1, 128>}, {transform_indices = @transform_4, window_bounds = array<i64: 1, 1, 128>}]} {
    %c0_i32 = arith.constant 0 : i32
    %0 = arith.cmpi eq, %arg1, %c0_i32 : i32
    %1 = arith.extui %0 : i1 to i32
    %c0_i32_0 = arith.constant 0 : i32
    %2 = arith.cmpi ne, %1, %c0_i32_0 : i32
    scf.if %2 {
      %cst_28 = arith.constant 0.000000e+00 : f32
      %42 = vector.broadcast %cst_28 : f32 to vector<1x1x128xf32>
      %c0_29 = arith.constant 0 : index
      %c0_30 = arith.constant 0 : index
      %c0_31 = arith.constant 0 : index
      %43 = vector.load %arg4[%c0_29, %c0_30, %c0_31] : memref<1x1x128xf32, #tpu.memory_space<vmem>>, vector<1x1x128xf32>
      tpu.vector_store %arg4[%c0_29, %c0_30, %c0_31], %42 {strides = array<i32>} : memref<1x1x128xf32, #tpu.memory_space<vmem>>, vector<1x1x128xf32>,
      %cst_32 = arith.constant 0.000000e+00 : f32
      %44 = vector.broadcast %cst_32 : f32 to vector<1x1x128xf32>
      %c0_33 = arith.constant 0 : index
      %c0_34 = arith.constant 0 : index
      %c0_35 = arith.constant 0 : index
      %45 = vector.load %arg5[%c0_33, %c0_34, %c0_35] : memref<1x1x128xf32, #tpu.memory_space<vmem>>, vector<1x1x128xf32>
      tpu.vector_store %arg5[%c0_33, %c0_34, %c0_35], %44 {strides = array<i32>} : memref<1x1x128xf32, #tpu.memory_space<vmem>>, vector<1x1x128xf32>,
      %cst_36 = arith.constant 0.000000e+00 : f32
      %46 = vector.broadcast %cst_36 : f32 to vector<1x1x128xf32>
      %c0_37 = arith.constant 0 : index
      %c0_38 = arith.constant 0 : index
      %c0_39 = arith.constant 0 : index
      %47 = vector.load %arg6[%c0_37, %c0_38, %c0_39] : memref<1x1x128xf32, #tpu.memory_space<vmem>>, vector<1x1x128xf32>
      tpu.vector_store %arg6[%c0_37, %c0_38, %c0_39], %46 {strides = array<i32>} : memref<1x1x128xf32, #tpu.memory_space<vmem>>, vector<1x1x128xf32>,
    } else {
    }
    %c0 = arith.constant 0 : index
    %c0_1 = arith.constant 0 : index
    %c0_2 = arith.constant 0 : index
    %3 = vector.load %arg2[%c0, %c0_1, %c0_2] : memref<1x8x128xf32, #tpu.memory_space<vmem>>, vector<1x8x128xf32>
    %4 = vector.shape_cast %3 : vector<1x8x128xf32> to vector<8x128xf32>
    %c0_3 = arith.constant 0 : index
    %c0_4 = arith.constant 0 : index
    %c0_5 = arith.constant 0 : index
    %5 = vector.load %arg3[%c0_3, %c0_4, %c0_5] : memref<1x8x128xf32, #tpu.memory_space<vmem>>, vector<1x8x128xf32>
    %6 = vector.shape_cast %5 : vector<1x8x128xf32> to vector<8x128xf32>
    %7 = arith.mulf %4, %6 : vector<8x128xf32>
    %c0_6 = arith.constant 0 : index
    %c0_7 = arith.constant 0 : index
    %c0_8 = arith.constant 0 : index
    %8 = vector.load %arg4[%c0_6, %c0_7, %c0_8] : memref<1x1x128xf32, #tpu.memory_space<vmem>>, vector<1x1x128xf32>
    %9 = vector.shape_cast %8 : vector<1x1x128xf32> to vector<1x128xf32>
    %cst = arith.constant dense<0.000000e+00> : vector<128xf32>
    %10 = vector.multi_reduction <add>, %7, %cst [0] : vector<8x128xf32> to vector<128xf32>
    %11 = vector.shape_cast %10 : vector<128xf32> to vector<1x128xf32>
    %12 = arith.addf %9, %11 : vector<1x128xf32>
    %c0_9 = arith.constant 0 : index
    %c0_10 = arith.constant 0 : index
    %c0_11 = arith.constant 0 : index
    %13 = vector.load %arg4[%c0_9, %c0_10, %c0_11] : memref<1x1x128xf32, #tpu.memory_space<vmem>>, vector<1x1x128xf32>
    %14 = vector.shape_cast %13 : vector<1x1x128xf32> to vector<1x128xf32>
    %15 = vector.shape_cast %12 : vector<1x128xf32> to vector<1x1x128xf32>
    tpu.vector_store %arg4[%c0_9, %c0_10, %c0_11], %15 {strides = array<i32>} : memref<1x1x128xf32, #tpu.memory_space<vmem>>, vector<1x1x128xf32>,
    %c0_12 = arith.constant 0 : index
    %c0_13 = arith.constant 0 : index
    %c0_14 = arith.constant 0 : index
    %16 = vector.load %arg5[%c0_12, %c0_13, %c0_14] : memref<1x1x128xf32, #tpu.memory_space<vmem>>, vector<1x1x128xf32>
    %17 = vector.shape_cast %16 : vector<1x1x128xf32> to vector<1x128xf32>
    %18 = arith.addf %4, %6 : vector<8x128xf32>
    %cst_15 = arith.constant dense<0.000000e+00> : vector<128xf32>
    %19 = vector.multi_reduction <add>, %18, %cst_15 [0] : vector<8x128xf32> to vector<128xf32>
    %20 = vector.shape_cast %19 : vector<128xf32> to vector<1x128xf32>
    %21 = arith.addf %17, %20 : vector<1x128xf32>
    %c0_16 = arith.constant 0 : index
    %c0_17 = arith.constant 0 : index
    %c0_18 = arith.constant 0 : index
    %22 = vector.load %arg5[%c0_16, %c0_17, %c0_18] : memref<1x1x128xf32, #tpu.memory_space<vmem>>, vector<1x1x128xf32>
    %23 = vector.shape_cast %22 : vector<1x1x128xf32> to vector<1x128xf32>
    %24 = vector.shape_cast %21 : vector<1x128xf32> to vector<1x1x128xf32>
    tpu.vector_store %arg5[%c0_16, %c0_17, %c0_18], %24 {strides = array<i32>} : memref<1x1x128xf32, #tpu.memory_space<vmem>>, vector<1x1x128xf32>,
    %cst_19 = arith.constant 0.000000e+00 : f32
    %25 = vector.broadcast %cst_19 : f32 to vector<8x128xf32>
    %26 = arith.maximumf %4, %25 : vector<8x128xf32>
    %27 = arith.subf %26, %7 : vector<8x128xf32>
    %28 = math.absf %4 : vector<8x128xf32>
    %cst_20 = arith.constant 0.000000e+00 : f32
    %29 = vector.broadcast %cst_20 : f32 to vector<8x128xf32>
    %30 = arith.subf %29, %28 : vector<8x128xf32>
    %31 = math.exp %30 : vector<8x128xf32>
    %32 = math.log1p %31 : vector<8x128xf32>
    %33 = arith.addf %27, %32 : vector<8x128xf32>
    %c0_21 = arith.constant 0 : index
    %c0_22 = arith.constant 0 : index
    %c0_23 = arith.constant 0 : index
    %34 = vector.load %arg6[%c0_21, %c0_22, %c0_23] : memref<1x1x128xf32, #tpu.memory_space<vmem>>, vector<1x1x128xf32>
    %35 = vector.shape_cast %34 : vector<1x1x128xf32> to vector<1x128xf32>
    %cst_24 = arith.constant dense<0.000000e+00> : vector<128xf32>
    %36 = vector.multi_reduction <add>, %33, %cst_24 [0] : vector<8x128xf32> to vector<128xf32>
    %37 = vector.shape_cast %36 : vector<128xf32> to vector<1x128xf32>
    %38 = arith.addf %35, %37 : vector<1x128xf32>
    %c0_25 = arith.constant 0 : index
    %c0_26 = arith.constant 0 : index
    %c0_27 = arith.constant 0 : index
    %39 = vector.load %arg6[%c0_25, %c0_26, %c0_27] : memref<1x1x128xf32, #tpu.memory_space<vmem>>, vector<1x1x128xf32>
    %40 = vector.shape_cast %39 : vector<1x1x128xf32> to vector<1x128xf32>
    %41 = vector.shape_cast %38 : vector<1x128xf32> to vector<1x1x128xf32>
    tpu.vector_store %arg6[%c0_25, %c0_26, %c0_27], %41 {strides = array<i32>} : memref<1x1x128xf32, #tpu.memory_space<vmem>>, vector<1x1x128xf32>,
    return
  }
  func.func @transform_0(%arg0: i32, %arg1: i32) -> (i32, i32, i32) {
    %c0_i32 = arith.constant 0 : i32
    %c0_i32_0 = arith.constant 0 : i32
    return %arg0, %arg1, %c0_i32 : i32, i32, i32
  }
  func.func @transform_1(%arg0: i32, %arg1: i32) -> (i32, i32, i32) {
    %c0_i32 = arith.constant 0 : i32
    %c0_i32_0 = arith.constant 0 : i32
    return %arg0, %arg1, %c0_i32 : i32, i32, i32
  }
  func.func @transform_2(%arg0: i32, %arg1: i32) -> (i32, i32, i32) {
    %c0_i32 = arith.constant 0 : i32
    %c0_i32_0 = arith.constant 0 : i32
    %c0_i32_1 = arith.constant 0 : i32
    return %arg0, %c0_i32, %c0_i32_0 : i32, i32, i32
  }
  func.func @transform_3(%arg0: i32, %arg1: i32) -> (i32, i32, i32) {
    %c0_i32 = arith.constant 0 : i32
    %c0_i32_0 = arith.constant 0 : i32
    %c0_i32_1 = arith.constant 0 : i32
    return %arg0, %c0_i32, %c0_i32_0 : i32, i32, i32
  }
  func.func @transform_4(%arg0: i32, %arg1: i32) -> (i32, i32, i32) {
    %c0_i32 = arith.constant 0 : i32
    %c0_i32_0 = arith.constant 0 : i32
    %c0_i32_1 = arith.constant 0 : i32
    return %arg0, %c0_i32, %c0_i32_0 : i32, i32, i32
  }
}

</mosaic_0001>

<bundles_post_ra>
// kernel: tpu_custom_call.1
= control target key start
LH: loop header
LB: loop body
LE: loop exit
PB: predicated region body
PF: predicated region fallthrough
CT: control target
= control target key end

     0   :  { %10 = vsyncpa [#allocation3], 0  ;;  %s1198_s0 = inlined_call_operand.hbm [shape: f32[2,8,128], index: 0, kind: input, shape index: {}]   ;;  %s1199_s1 = inlined_call_operand.hbm [shape: f32[2,8,128], index: 1, kind: input, shape index: {}]   ;;  %s1200_s2 = inlined_call_operand.hbm [shape: f32[2,1,128], index: 2, kind: output, shape index: {0}]   ;;  %s1201_s3 = inlined_call_operand.hbm [shape: f32[2,1,128], index: 3, kind: output, shape index: {1}]   ;;  %s1202_s4 = inlined_call_operand.hbm [shape: f32[2,1,128], index: 4, kind: output, shape index: {2}]  }
   0x1   :  { %12 = vsyncpa [#allocation3 + $0x1], 0 }
   0x2   :  { %13 = vsyncpa [#allocation6], 0 }
   0x3   :  { %15 = vsyncpa [#allocation6 + $0x1], 0 }
   0x4   :  { %16 = vsyncpa [#allocation4], 0 }
   0x5   :  { %18 = vsyncpa [#allocation4 + $0x1], 0 }
   0x6   :  { %19 = vsyncpa [#allocation9], 0 }
   0x7   :  { %21 = vsyncpa [#allocation9 + $0x1], 0  ;;  %s873_s15 = smov 0   ;;  %s875_s16 = smov 0  }
   0x8   :  { %s877_s17 = smov 0   ;;  %s879_s18 = smov 0  }
   0x9   :  { %s881_s19 = smov 0   ;;  %s883_s20 = smov 0  }
   0xa LB: > { %s904_s21 = sadd.s32 4294967295, %s840_s20   ;;  %s1203_s22 = sadd.s32 4294967294, %s840_s20   ;;  %s840_s20 = sphi %s883_s20, %s27_s20   ;;  %s836_s19 = sphi %s881_s19, %s1224_s19   ;;  %s832_s18 = sphi %s879_s18, %s1223_s18   ;;  %s828_s17 = sphi %s877_s17, %s1222_s17   ;;  %s824_s16 = sphi %s875_s16, %s1221_s16   ;;  %s820_s15 = sphi %s873_s15, %s1220_s15  }
   0xb   : > { %s39_s23 = sadd.s32 1, %s836_s19  ;;  %s48_s24 = sadd.s32 1, %s828_s17 }
   0xc   : > { %p41_p0 = scmp.ge.s32.totalorder %s39_s23, 2  ;;  %p55_p1 = scmp.ne.s32.totalorder %s828_s17, %s824_s16 }
   0xd   : > { %p56_p2 = scmp.eq.s32.totalorder %s840_s20, 0  ;;  %p61_p3 = scmp.ne.s32.totalorder %s824_s16, %s820_s15 }
   0xe   : > { %s1226_s23 = smov (%p41_p0, %s39_s23), 0  ;;  %p62_p5 = scmp.eq.s32.totalorder %s904_s21, 0 }
   0xf   : > { %p916_p4 = por %p56_p2, %p55_p1  ;;  %s43_s26 = ssub.s32 %s836_s19, %s1226_s23 }
  0x10   : > { %p113_p6 = scmp.eq.s32.totalorder %s904_s21, 1  ;;  %p46_p7 = scmp.eq.s32.totalorder %s43_s26, 0 }
  0x11   : > { %p924_p8 = por %p62_p5, %p61_p3  ;;  %p119_p10 = scmp.eq.s32.totalorder %s1203_s22, 1 }
  0x12   : > { %p928_p9 = por %p113_p6, %p55_p1  ;;  %p579_p13 = scmp.lt.s32.totalorder %s840_s20, 2 }
  0x13   : > { %s1207_s27 = scalar_select %p924_p8, 1, 0 }
  0x14   : > { %s1208_s28 = scalar_select %p928_p9, 1, 0 }
  0x15   : > { %s935_s29 = scalar_select %p46_p7, %s828_s17, %s48_s24  }
  0x16   : > { %p937_p11 = por %p119_p10, %p61_p3  ;;  %s944_s5 = sand.u32 1, %s828_s17  }
  0x17   : > { %s540_s6 = sshll.u32 %s944_s5, 3  ;;  %s541_s7 = sshll.u32 %s836_s19, 7 }
  0x18   : > { %s1209_s30 = scalar_select %p937_p11, 1, 0 }
  0x19   : > { %s953_s10 = scalar_lea.hbm %s1198_s0, %s541_s7  ;;  %s195_s11 = scalar_lea.vmem [#allocation2], %s540_s6 }
  0x1a   : > { %s203_s12 = sshll.u32 %s195_s11, 4  ;;  %p961_p0 = pnand %p579_p13, %p916_p4  ;;  %s957_s12 = int_to_ptr.vmem [resolvable:$true] %s203_s12 }
  0x1b   : > { %s192_s14 = scalar_lea.sflag [#allocation3], %s944_s5  ;;  %s634_s24 = scalar_lea.hbm %s953_s10, 128 }
  0x1c   : > { %p635_p3 = scmp.ne.s32.totalorder %s953_s10, %s634_s24  ;;  %p636_p5 = pneg %p961_p0 }
  0x1d   : > { %s639_s25 = scalar_lea.hbm %s1198_s0, 256  ;;  %p640_p4 = scmp.lt.u32.totalorder %s953_s10, %s1198_s0 }
  0x1e   : > { %p637_p6 = pnand %p636_p5, %p635_p3  ;;  %p641_p10 = scmp.lt.u32.totalorder %s639_s25, %s634_s24 }
  0x1f   : > { %p643_p12 = scmp.lt.u32.totalorder %s634_s24, %s953_s10 }
  0x20   : > { %p638_p7 = pneg %p637_p6  ;;  %p642_p13 = por %p641_p10, %p640_p4 }
  0x22   : > { %p644_p1 = por %p643_p12, %p642_p13 }
  0x24   : > { %p645_p2 = pnand %p644_p1, %p638_p7 }
  0x26   : > { %648 = shalt.err (!%p645_p2)
}
  0x27   : > { %s649_s22 = scalar_lea.vmem %s957_s12, 128  ;;  %s842_s26 = smov [#allocation2]  }
  0x28   : > { %p650_p3 = scmp.ne.s32.totalorder %s957_s12, %s649_s22  ;;  %s654_s8 = sshll.u32 %s842_s26, 4  ;;  %s655_s8 = int_to_ptr.vmem [resolvable:$false] %s654_s8 }
  0x29   : > { %s656_s9 = scalar_lea.vmem %s655_s8, 256  ;;  %p657_p9 = scmp.lt.s32.totalorder %s957_s12, %s655_s8 }
  0x2a   : > { %p652_p6 = pnand %p650_p3, %p636_p5  ;;  %p658_p4 = scmp.lt.s32.totalorder %s656_s9, %s649_s22 }
  0x2c   : > { %p653_p11 = pneg %p652_p6  ;;  %p659_p10 = por %p658_p4, %p657_p9 }
  0x2e   : > { %p660_p12 = pnand %p659_p10, %p653_p11 }
  0x30   : > { %663 = shalt.err (!%p660_p12)
}
  0x31   : > { %565 = dma.hbm_to_vmem [thread:$0]  (!%p961_p0), %s953_s10, 128, %s957_s12, %s192_s14  }
  0x32   : > { %p1211_p1 = scmp.lt.s32.totalorder %s840_s20, 3  ;;  %p1212_p2 = scmp.ge.s32.totalorder %s840_s20, 1 }
  0x33   : > { %s1006_s11 = scalar_lea.hbm %s1199_s1, %s541_s7  ;;  %s214_s26 = scalar_lea.vmem [#allocation5], %s540_s6 }
  0x34   : > { %p997_p7 = pnand %p1212_p2, %p1211_p1  ;;  %s222_s8 = sshll.u32 %s214_s26, 4  ;;  %s223_s8 = int_to_ptr.vmem [resolvable:$true] %s222_s8 }
  0x35   : > { %s211_s10 = scalar_lea.sflag [#allocation6], %s944_s5  ;;  %s664_s12 = scalar_lea.hbm %s1006_s11, 128 }
  0x36   : > { %s1213_s24 = scalar_select %p997_p7, 1, 0 }
  0x37   : > { %p665_p9 = scmp.ne.s32.totalorder %s1006_s11, %s664_s12  ;;  %s669_s7 = scalar_lea.hbm %s1199_s1, 256 }
  0x38   : > { %p670_p3 = scmp.lt.u32.totalorder %s1006_s11, %s1199_s1  ;;  %p671_p6 = scmp.lt.u32.totalorder %s669_s7, %s664_s12 }
  0x39   : > { %p667_p11 = pnand %p665_p9, %p636_p5  ;;  %p673_p10 = scmp.lt.u32.totalorder %s664_s12, %s1006_s11 }
  0x3a   : > { %p672_p4 = por %p671_p6, %p670_p3 }
  0x3b   : > { %p668_p13 = pneg %p667_p11 }
  0x3c   : > { %p674_p12 = por %p673_p10, %p672_p4 }
  0x3e   : > { %p675_p1 = pnand %p674_p12, %p668_p13 }
  0x40   : > { %678 = shalt.err (!%p675_p1)
}
  0x41   : > { %s679_s5 = scalar_lea.vmem %s223_s8, 128  ;;  %s843_s6 = smov [#allocation5]  }
  0x42   : > { %p680_p2 = scmp.ne.s32.totalorder %s223_s8, %s679_s5  ;;  %s684_s26 = sshll.u32 %s843_s6, 4  ;;  %s685_s26 = int_to_ptr.vmem [resolvable:$false] %s684_s26 }
  0x43   : > { %s686_s14 = scalar_lea.vmem %s685_s26, 256  ;;  %p687_p8 = scmp.lt.s32.totalorder %s223_s8, %s685_s26 }
  0x44   : > { %p682_p9 = pnand %p680_p2, %p636_p5  ;;  %p688_p7 = scmp.lt.s32.totalorder %s686_s14, %s679_s5 }
  0x46   : > { %p683_p11 = pneg %p682_p9  ;;  %p689_p3 = por %p688_p7, %p687_p8 }
  0x48   : > { %p690_p6 = pnand %p689_p3, %p683_p11 }
  0x4a   : > { %693 = shalt.err (!%p690_p6)
}
  0x4b   : > { %568 = dma.hbm_to_vmem [thread:$0]  (!%p961_p0), %s1006_s11, 128, %s223_s8, %s211_s10  }
  0x4c   : > { %p1214_p13 = scmp.ne.s32.totalorder %s1213_s24, 0 }
  0x4d   : > { %s1033_s12 = sand.u32 (!%p1214_p13), 1, %s824_s16   ;;  %p1215_p5 = scmp.ne.s32.totalorder (!%p1214_p13), %s1207_s27, 0 }
  0x4e   : > { %231 = sbr.rel (%p1214_p13) target bundleno = 186 (0xba), region = 28  ;;  %s545_s9 = sshll.u32 (!%p1214_p13), %s1033_s12, 3 }
  0x4f   : > { %s234_s7 = scalar_lea.sflag (!%p1214_p13), [#allocation3], %s1033_s12  ;;  %s237_s22 = scalar_lea.vmem (!%p1214_p13), [#allocation2], %s545_s9 }
  0x55   : > { %803 = dma.done.wait (%p1215_p5), %s234_s7, 128  }
  0x56   : > { %805 = vsyncadd (%p1215_p5), %s234_s7, 4294967168  ;;  %s243_s13 = scalar_lea.sflag [#allocation6], %s1033_s12  ;;  %s246_s11 = scalar_lea.vmem [#allocation5], %s545_s9 }
  0x57   : > { %807 = dma.done.wait (%p1215_p5), %s243_s13, 128  }
  0x58   : > { %809 = vsyncadd (%p1215_p5), %s243_s13, 4294967168  ;;  %s1047_s24 = scalar_lea.vmem [#allocation8], %s1033_s12  ;;  %v844_v0 = vmov 0.0   ;;  %s1051_s8 = scalar_lea.vmem [#allocation7], %s1033_s12  ;;  %v1058_v1 = vld [vmem:[%s237_s22] sm:$0xff]  ;;  %v291_v2 = vld [vmem:[%s246_s11] sm:$0xff] }
  0x59   : > { %288 = vst [vmem:[%s1047_s24] sm:$0x1] %v844_v0  ;;  %287 = vst [vmem:[%s1051_s8] sm:$0x1] %v844_v0  ;;  %s1055_s10 = scalar_lea.vmem [#allocation10], %s1033_s12  ;;  %v1061_v3 = vmul.f32 %v291_v2, %v1058_v1  ;;  %v303_v4 = vadd.f32 %v291_v2, %v1058_v1  ;;  %v314_v5 = vand.u32 2147483647, %v1058_v1  ;;  %s341_s27 = sand.u32 1, %s904_s21  }
  0x5a   : > { %289 = vst [vmem:[%s1055_s10] sm:$0x1] %v844_v0  ;;  %s1069_s25 = sshll.u32 %s832_s18, 4  ;;  %s371_s5 = sshll.u32 %s1047_s24, 4  ;;  %s1081_s5 = int_to_ptr.vmem [resolvable:$true] %s371_s5 }
  0x5b   : > { %v304_v6 = vrot.slane %v303_v4, 4  ;;  %v315_v7 = vsub.f32 0.0, %v314_v5  ;;  %v294_v8 = vrot.slane %v1061_v3, 4  ;;  %s358_s6 = sshll.u32 %s1051_s8, 4  ;;  %s1079_s9 = scalar_lea.hbm %s1201_s3, %s1069_s25  ;;  %s1089_s6 = int_to_ptr.vmem [resolvable:$true] %s358_s6 }
  0x5c   : > { %s1087_s7 = scalar_lea.hbm %s1200_s2, %s1069_s25  ;;  %s1096_s22 = scalar_lea.sflag [#allocation9], %s341_s27 }
  0x5d   : > { %v305_v9 = vadd.f32 %v304_v6, %v303_v4  ;;  %v316_v10 = vmul.f32 1.442695, %v315_v7  ;;  %v295_v11 = vadd.f32 %v294_v8, %v1061_v3  ;;  %s694_s13 = scalar_lea.vmem %s1081_s5, 16  ;;  %p1216_p0 = scmp.ne.s32.totalorder %s1208_s28, 0 }
  0x5e   : > { %p695_p8 = scmp.ne.s32.totalorder %s1081_s5, %s694_s13  ;;  %s845_s11 = smov [#allocation8]  }
  0x5f   : > { %v306_v12 = vrot.slane %v305_v9, 2  ;;  %630 = vpow2.f32 %v316_v10  ;;  %v296_v13 = vrot.slane %v295_v11, 2  ;;  %s698_s26 = sshll.u32 %s845_s11, 4  ;;  %s699_s26 = int_to_ptr.vmem [resolvable:$false] %s698_s26 }
  0x60   : > { %v302_v18 = vld [vmem:[%s1047_s24] sm:$0x1]  ;;  %p696_p7 = pnand %p695_p8, %p1216_p0  ;;  %s700_s14 = scalar_lea.vmem %s699_s26, 32 }
  0x61   : > { %v307_v14 = vadd.f32 %v306_v12, %v305_v9  ;;  %v297_v15 = vadd.f32 %v296_v13, %v295_v11  ;;  %v293_v19 = vld [vmem:[%s1051_s8] sm:$0x1]  ;;  %p701_p10 = scmp.lt.s32.totalorder %s1081_s5, %s699_s26  ;;  %p702_p12 = scmp.lt.s32.totalorder %s700_s14, %s694_s13 }
  0x62   : > { %p697_p4 = pneg %p696_p7 }
  0x63   : > { %v308_v16 = vrot.slane %v307_v14, 1  ;;  %v298_v17 = vrot.slane %v297_v15, 1  ;;  %p703_p1 = por %p702_p12, %p701_p10 }
  0x65   : > { %v309_v20 = vadd.f32 %v308_v16, %v307_v14  ;;  %v299_v21 = vadd.f32 %v298_v17, %v297_v15  ;;  %p704_p2 = pnand %p703_p1, %p697_p4 }
  0x67   : > { %v310_v22 = vadd.f32 %v309_v20, %v302_v18  ;;  %v300_v23 = vadd.f32 %v299_v21, %v293_v19 }
  0x69   : > { %v1091_v24 = vpop.eup %630  ;;  %311 = vst [vmem:[%s1047_s24] sm:$0x1] %v310_v22  ;;  %301 = vst [vmem:[%s1051_s8] sm:$0x1] %v300_v23 }
  0x6a   : > { %v318_v25 = vadd.f32 1.0, %v1091_v24 }
  0x6b   : > { %707 = shalt.err (!%p704_p2)
}
  0x6c   : > { %s708_s24 = scalar_lea.hbm %s1079_s9, 16  ;;  %s712_s18 = scalar_lea.hbm %s1201_s3, 32 }
  0x6d   : > { %p709_p9 = scmp.ne.s32.totalorder %s1079_s9, %s708_s24  ;;  %p713_p6 = scmp.lt.u32.totalorder %s1079_s9, %s1201_s3 }
  0x6e   : > { %p714_p13 = scmp.lt.u32.totalorder %s712_s18, %s708_s24  ;;  %p716_p8 = scmp.lt.u32.totalorder %s708_s24, %s1079_s9 }
  0x6f   : > { %p710_p11 = pnand %p709_p9, %p1216_p0 }
  0x70   : > { %p715_p5 = por %p714_p13, %p713_p6 }
  0x71   : > { %p711_p3 = pneg %p710_p11 }
  0x72   : > { %p717_p7 = por %p716_p8, %p715_p5 }
  0x74   : > { %p718_p4 = pnand %p717_p7, %p711_p3 }
  0x76   : > { %721 = shalt.err (!%p718_p4)
}
  0x77   : > { %557 = dma.vmem_to_hbm [thread:$0]  (%p1216_p0), %s1081_s5, 16, %s1079_s9, %s1096_s22  }
  0x78   : > { %s338_s13 = scalar_lea.sflag [#allocation4], %s1033_s12  ;;  %s722_s26 = scalar_lea.vmem %s1089_s6, 16 }
  0x79   : > { %p723_p10 = scmp.ne.s32.totalorder %s1089_s6, %s722_s26  ;;  %s846_s14 = smov [#allocation7]  }
  0x7a   : > { %s726_s24 = sshll.u32 %s846_s14, 4  ;;  %s727_s24 = int_to_ptr.vmem [resolvable:$false] %s726_s24 }
  0x7b   : > { %p724_p12 = pnand %p723_p10, %p1216_p0  ;;  %s728_s8 = scalar_lea.vmem %s727_s24, 32 }
  0x7c   : > { %p729_p2 = scmp.lt.s32.totalorder %s1089_s6, %s727_s24  ;;  %p730_p9 = scmp.lt.s32.totalorder %s728_s8, %s722_s26 }
  0x7d   : > { %p725_p1 = pneg %p724_p12 }
  0x7e   : > { %p731_p11 = por %p730_p9, %p729_p2 }
  0x80   : > { %p732_p3 = pnand %p731_p11, %p725_p1 }
  0x82   : > { %735 = shalt.err (!%p732_p3)
}
  0x83   : > { %s736_s12 = scalar_lea.hbm %s1087_s7, 16  ;;  %s740_s27 = scalar_lea.hbm %s1200_s2, 32 }
  0x84   : > { %p737_p6 = scmp.ne.s32.totalorder %s1087_s7, %s736_s12  ;;  %p741_p8 = scmp.lt.u32.totalorder %s1087_s7, %s1200_s2 }
  0x85   : > { %p742_p7 = scmp.lt.u32.totalorder %s740_s27, %s736_s12  ;;  %p744_p10 = scmp.lt.u32.totalorder %s736_s12, %s1087_s7 }
  0x86   : > { %p738_p13 = pnand %p737_p6, %p1216_p0 }
  0x87   : > { %p743_p4 = por %p742_p7, %p741_p8 }
  0x88   : > { %p739_p5 = pneg %p738_p13 }
  0x89   : > { %p745_p12 = por %p744_p10, %p743_p4 }
  0x8b   : > { %p746_p1 = pnand %p745_p12, %p739_p5 }
  0x8d   : > { %749 = shalt.err (!%p746_p1)
}
  0x8e   : > { %556 = dma.vmem_to_hbm [thread:$0]  (%p1216_p0), %s1089_s6, 16, %s1087_s7, %s338_s13   ;;  %632 = vlog2.f32 %v318_v25  ;;  %v321_v26 = vmul.f32 -0.5, %v1091_v24  ;;  %v312_v28 = vmax.f32 %v1058_v1, 0.0  ;;  %v324_v29 = vand.u32 2147483647, %v1091_v24 }
  0x8f   : > { %s384_s6 = sshll.u32 %s1055_s10, 4  ;;  %v328_v41 = vld [vmem:[%s1055_s10] sm:$0x1]  ;;  %s382_s13 = scalar_lea.hbm %s1202_s4, %s1069_s25  ;;  %s1149_s6 = int_to_ptr.vmem [resolvable:$true] %s384_s6 }
  0x90   : > { %v322_v27 = vadd.f32 1.0, %v321_v26  ;;  %v313_v32 = vsub.f32 %v312_v28, %v1061_v3  ;;  %vm325_vm0 = vcmp.lt.f32.partialorder %v324_v29, 0.0004427343  ;;  %s750_s26 = scalar_lea.vmem %s1149_s6, 16  ;;  %s847_s14 = smov [#allocation10]  }
  0x91   : > { %p751_p2 = scmp.ne.s32.totalorder %s1149_s6, %s750_s26  ;;  %s754_s24 = sshll.u32 %s847_s14, 4  ;;  %s755_s24 = int_to_ptr.vmem [resolvable:$false] %s754_s24 }
  0x92   : > { %v323_v30 = vmul.f32 %v1091_v24, %v322_v27  ;;  %s756_s8 = scalar_lea.vmem %s755_s24, 32  ;;  %p757_p3 = scmp.lt.s32.totalorder %s1149_s6, %s755_s24 }
  0x93   : > { %p752_p9 = pnand %p751_p2, %p1216_p0  ;;  %p758_p6 = scmp.lt.s32.totalorder %s756_s8, %s750_s26 }
  0x95   : > { %p753_p11 = pneg %p752_p9  ;;  %p759_p13 = por %p758_p6, %p757_p3 }
  0x97   : > { %p760_p5 = pnand %p759_p13, %p753_p11 }
  0x98   : > { %v633_v31 = vpop.eup %632 }
  0x99   : > { %v320_v33 = vmul.f32 0.6931472, %v633_v31 }
  0x9b   : > { %v326_v34 = vsel %vm325_vm0, %v323_v30, %v320_v33 }
  0x9c   : > { %v327_v35 = vadd.f32 %v326_v34, %v313_v32 }
  0x9e   : > { %v329_v36 = vrot.slane %v327_v35, 4 }
  0xa0   : > { %v330_v37 = vadd.f32 %v329_v36, %v327_v35 }
  0xa2   : > { %v331_v38 = vrot.slane %v330_v37, 2 }
  0xa4   : > { %v332_v39 = vadd.f32 %v331_v38, %v330_v37 }
  0xa6   : > { %v333_v40 = vrot.slane %v332_v39, 1 }
  0xa8   : > { %v334_v42 = vadd.f32 %v333_v40, %v332_v39 }
  0xaa   : > { %v335_v43 = vadd.f32 %v334_v42, %v328_v41 }
  0xac   : > { %336 = vst [vmem:[%s1055_s10] sm:$0x1] %v335_v43 }
  0xad   : > { %763 = shalt.err (!%p760_p5)
}
  0xae   : > { %s764_s12 = scalar_lea.hbm %s382_s13, 16  ;;  %s768_s5 = scalar_lea.hbm %s1202_s4, 32 }
  0xaf   : > { %p765_p8 = scmp.ne.s32.totalorder %s382_s13, %s764_s12  ;;  %p769_p10 = scmp.lt.u32.totalorder %s382_s13, %s1202_s4 }
  0xb0   : > { %p770_p12 = scmp.lt.u32.totalorder %s768_s5, %s764_s12  ;;  %p772_p2 = scmp.lt.u32.totalorder %s764_s12, %s382_s13 }
  0xb1   : > { %p766_p7 = pnand %p765_p8, %p1216_p0 }
  0xb2   : > { %p771_p1 = por %p770_p12, %p769_p10 }
  0xb3   : > { %p767_p4 = pneg %p766_p7 }
  0xb4   : > { %p773_p9 = por %p772_p2, %p771_p1 }
  0xb6   : > { %p774_p11 = pnand %p773_p9, %p767_p4 }
  0xb8   : > { %777 = shalt.err (!%p774_p11)
}
  0xb9   : > { %558 = dma.vmem_to_hbm [thread:$0]  (%p1216_p0), %s1149_s6, 16, %s382_s13, %s1096_s22  }
  0xba PF: > { %s396_s18 = sand.u32 1, %s820_s15   ;;  %p1217_p3 = scmp.ne.s32.totalorder %s1209_s30, 0 }
  0xbb   : > { %p1218_p6 = scmp.ge.s32.totalorder %s840_s20, 2  ;;  %s397_s21 = scalar_lea.sflag [#allocation4], %s396_s18 }
  0xbd   : > { %p570_p13 = pnand %p1218_p6, %p1217_p3 }
  0xbf   : > { %811 = dma.done.wait (!%p570_p13), %s397_s21, 16  }
  0xc0   : > { %813 = vsyncadd (!%p570_p13), %s397_s21, 4294967280  ;;  %s1219_s7 = sadd.s32 4294967294, %s840_s20  }
  0xc1   : > { %s404_s11 = sand.u32 1, %s1219_s7  }
  0xc2   : > { %s405_s26 = scalar_lea.sflag [#allocation9], %s404_s11 }
  0xc3   : > { %815 = dma.done.wait (!%p570_p13), %s405_s26, 32  }
  0xc4   : > { %817 = vsyncadd (!%p570_p13), %s405_s26, 4294967264  ;;  %s27_s20 = sadd.s32 1, %s840_s20   ;;  %s1220_s15 = smov %s824_s16 }
  0xc5   : > { %p24_p0 = scmp.ge.s32.totalorder %s27_s20, 4   ;;  %s1221_s16 = smov %s828_s17 }
  0xc6   : > { %s1222_s17 = smov %s935_s29  ;;  %s1223_s18 = smov %s836_s19 }
  0xc7   : > { %s1224_s19 = smov %s1226_s23  ;;  %26 = sbr.rel (!%p24_p0) target bundleno = 10 (0xa), region = 122 }
  0xce   :  { %417 = vsyncpa [#allocation3], 1 }
  0xcf   :  { %419 = vsyncpa [#allocation3 + $0x1], 1 }
  0xd0   :  { %420 = vsyncpa [#allocation6], 1 }
  0xd1   :  { %422 = vsyncpa [#allocation6 + $0x1], 1 }
  0xd2   :  { %423 = vsyncpa [#allocation4], 1 }
  0xd3   :  { %425 = vsyncpa [#allocation4 + $0x1], 1 }
  0xd4   :  { %426 = vsyncpa [#allocation9], 1 }
  0xd5   :  { %428 = vsyncpa [#allocation9 + $0x1], 1 }

</bundles_post_ra>
